<compile_context>
chip_gen: v7x
topology: tpu7x:2x2x1
jax: 0.10.0
libtpu: 0.0.40
codegen_flags: <defaults>
</compile_context>

<pallas_src>
import jax
import jax.numpy as jnp
from jax.experimental import pallas as pl
from jax.experimental.pallas import tpu as pltpu


def _make_wlp_kernel(num_layers):
    """o = sum_i w_norm[i] * x_i, accumulated in f32, one grid step per tile."""

    def kernel(w_ref, *refs):
        # w_ref : SMEM (L,) f32 -- pre-normalized layer weights (scalar prefetch)
        # refs  : L input tiles (TR, LANE) + 1 output tile (TR, LANE)
        x_refs = refs[:num_layers]
        o_ref = refs[num_layers]
        acc = w_ref[0] * x_refs[0][...].astype(jnp.float32)
        for i in range(1, num_layers):
            # TODO(synk): if a v7x bundle dump shows the VALU slot binding for
            # bf16 inputs, pairwise-accumulate two layers before the f32 upcast
            # to cut the number of casts; v5e/v6e are HBM-bound so keep f32 here.
            acc = acc + w_ref[i] * x_refs[i][...].astype(jnp.float32)
        o_ref[...] = acc.astype(o_ref.dtype)

    return kernel


def _row_map(i, w_ref):
    # All arrays share the same row tiling; the prefetched weights ref is unused.
    return (i, 0)


def _sublane_multiple(dtype):
    # Packed sublane granularity: 8 for 4-byte, 16 for 2-byte, 32 for 1-byte dtypes.
    return max(8, 32 // jnp.dtype(dtype).itemsize)


def _chip_budgets():
    """Return (pipeline_budget_bytes, vmem_limit_bytes) gated by physical VMEM."""
    phys = 64 * 1024 * 1024          # conservative default: v7x physical VMEM
    try:
        info = pltpu.get_tpu_info()
        v = getattr(info, "vmem_capacity_bytes", None)
        if v:
            phys = int(v)
    except Exception:
        pass
    if phys >= 128 * 1024 * 1024:    # v5e / v6e: 128 MiB physical VMEM
        return 28 * 1024 * 1024, 64 * 1024 * 1024
    # v7x (64 MiB physical) or unknown chip: keep double-buffered set well under.
    return 20 * 1024 * 1024, 32 * 1024 * 1024


def _choose_lane(total, H):
    if H % 128 == 0:
        return H                      # natural lane-dense layout
    if total % 128 == 0:
        return 128                    # fold [B,S,H] to 128 lanes (unmasked stores)
    # Rare fallback: no multiple of 128 divides the element count. Use the widest
    # divisor of `total` (<= 1024) so stores stay as lane-dense as possible.
    for cand in range(min(total, 1024), 0, -1):
        if total % cand == 0:
            return cand
    return H


def _choose_row_tile(rows, lane, in_itemsize, out_itemsize, num_layers, sub, budget_bytes):
    if rows <= sub:
        return rows                   # single full-extent block (always legal)
    # Per-input-block byte target (~2 MiB) amortizes the ~0.35 us per-step cost.
    target_rows = max(sub, (2 * 1024 * 1024) // (lane * in_itemsize))
    # Pipeline working set per row: double-buffered L inputs + 1 output, plus
    # ~2 f32 element-wise temporaries for the accumulation chain.
    per_row = lane * (2 * num_layers * in_itemsize + 2 * out_itemsize + 2 * 4)
    budget_rows = max(1, budget_bytes // per_row)
    # Always >= 2 grid steps: feeds v7x's second TensorCore and lets the
    # pipeline overlap DMA with compute even on small inputs.
    tr = min(target_rows, budget_rows, pl.cdiv(rows, 2))
    tr = max(sub, (tr // sub) * sub)  # align to packed sublane multiple
    # Prefer a tr that divides rows evenly (no masked trailing vst.msk block),
    # but never shrink by more than 2x to get one.
    if rows % tr != 0:
        t = tr - sub
        while t >= sub and 2 * t >= tr:
            if rows % t == 0:
                tr = t
                break
            t -= sub
    return tr


def weighted_layer_pooling(layers, layer_weights):
    """layers: sequence of L arrays, each [B, S, H]; layer_weights: [L]. Returns [B, S, H]."""
    layers = list(layers)
    L = len(layers)
    shape = layers[0].shape
    B, S, H = shape

    in_dtype = layers[0].dtype
    for x in layers[1:]:
        assert x.shape == shape, "all layer embeddings must share a shape"
        in_dtype = jnp.promote_types(in_dtype, x.dtype)
    layers = [x.astype(in_dtype) for x in layers]   # no-op when already uniform

    w = layer_weights.astype(jnp.float32)
    assert w.shape == (L,)
    # Fold the final division by sum(w) into the weights (wrapper-side, free).
    # NOTE: w.sum() == 0 yields NaN/inf, same failure mode as the PyTorch module.
    w_norm = w / jnp.sum(w)

    # Match PyTorch promotion: float32 weights * (possibly low-precision) embeddings.
    out_dtype = jnp.promote_types(in_dtype, jnp.float32)

    total = B * S * H
    lane = _choose_lane(total, H)
    rows = total // lane
    x2d = [x.reshape(rows, lane) for x in layers]   # contiguous reshape, no data movement

    in_itemsize = jnp.dtype(in_dtype).itemsize
    out_itemsize = jnp.dtype(out_dtype).itemsize
    sub = _sublane_multiple(in_dtype)
    budget_bytes, vmem_limit = _chip_budgets()
    tr = _choose_row_tile(rows, lane, in_itemsize, out_itemsize, L, sub, budget_bytes)

    grid = (pl.cdiv(rows, tr),)
    block = (tr, lane)

    out2d = pl.pallas_call(
        _make_wlp_kernel(L),
        out_shape=jax.ShapeDtypeStruct((rows, lane), out_dtype),
        grid_spec=pltpu.PrefetchScalarGridSpec(
            num_scalar_prefetch=1,
            grid=grid,
            in_specs=[pl.BlockSpec(block, _row_map) for _ in range(L)],
            out_specs=pl.BlockSpec(block, _row_map),
        ),
        compiler_params=pltpu.CompilerParams(
            dimension_semantics=("parallel",),   # row axis shards across v7x's 2 TCs
            vmem_limit_bytes=vmem_limit,
        ),
    )(w_norm, *x2d)

    return out2d.reshape(B, S, H)


class WeightedLayerPooling:
    """JAX/Pallas port of the PyTorch module (forward semantics only)."""

    def __init__(self, num_hidden_layers, layer_start=4, layer_weights=None):
        self.layer_start = layer_start
        self.num_hidden_layers = num_hidden_layers
        if layer_weights is None:
            # PyTorch init: torch.tensor([1] * (num_hidden_layers + 1 - layer_start), dtype=float)
            layer_weights = jnp.ones(
                (num_hidden_layers + 1 - layer_start,), dtype=jnp.float32)
        self.layer_weights = layer_weights

    def __call__(self, features):
        ft_all_layers = features["all_layer_embeddings"]
        # Only the layers actually used enter the kernel -- no stack, no copy of
        # the layers below layer_start.
        used_layers = list(ft_all_layers[self.layer_start:])
        weighted_average = weighted_layer_pooling(used_layers, self.layer_weights)
        features = dict(features)
        features.update({"token_embeddings": weighted_average})
        return features


if __name__ == "__main__":
    num_hidden_layers = 8
    layer_start = 4

    # --- Test 1: toy shapes, H < 128 -> folded 128-lane path, uniform weights ---
    B, S, H = 2, 8, 32
    keys = jax.random.split(jax.random.PRNGKey(0), num_hidden_layers + 1)
    all_layers = [jax.random.normal(k, (B, S, H), dtype=jnp.float32) for k in keys]
    module = WeightedLayerPooling(num_hidden_layers, layer_start=layer_start)
    out_features = module({"all_layer_embeddings": all_layers})
    token_emb = jax.block_until_ready(out_features["token_embeddings"])

    stacked = jnp.stack(all_layers)[layer_start:]
    w = module.layer_weights
    ref = (w[:, None, None, None] * stacked).sum(0) / w.sum()
    assert token_emb.shape == (B, S, H)
    assert jnp.allclose(token_emb, ref, atol=1e-5, rtol=1e-5), "mismatch (test 1)"

    # --- Test 2: H multiple of 128 (lane = H path), non-uniform weights ---
    B2, S2, H2 = 2, 16, 128
    keys2 = jax.random.split(jax.random.PRNGKey(1), num_hidden_layers + 1)
    all_layers2 = [jax.random.normal(k, (B2, S2, H2), dtype=jnp.float32) for k in keys2]
    lw2 = jnp.arange(1, num_hidden_layers + 2 - layer_start, dtype=jnp.float32)
    module2 = WeightedLayerPooling(num_hidden_layers, layer_start=layer_start,
                                   layer_weights=lw2)
    out2 = module2({"all_layer_embeddings": all_layers2})
    token_emb2 = jax.block_until_ready(out2["token_embeddings"])

    stacked2 = jnp.stack(all_layers2)[layer_start:]
    ref2 = (lw2[:, None, None, None] * stacked2).sum(0) / lw2.sum()
    assert token_emb2.shape == (B2, S2, H2)
    assert jnp.allclose(token_emb2, ref2, atol=1e-5, rtol=1e-5), "mismatch (test 2)"

    # --- Test 3: bf16 inputs -> f32 output (PyTorch promotion), sublane mult 16 ---
    B3, S3, H3 = 2, 8, 256
    keys3 = jax.random.split(jax.random.PRNGKey(2), num_hidden_layers + 1)
    all_layers3 = [jax.random.normal(k, (B3, S3, H3), dtype=jnp.bfloat16) for k in keys3]
    lw3 = jnp.arange(1, num_hidden_layers + 2 - layer_start, dtype=jnp.float32)
    module3 = WeightedLayerPooling(num_hidden_layers, layer_start=layer_start,
                                   layer_weights=lw3)
    out3 = module3({"all_layer_embeddings": all_layers3})
    token_emb3 = jax.block_until_ready(out3["token_embeddings"])

    stacked3 = jnp.stack(all_layers3)[layer_start:].astype(jnp.float32)
    ref3 = (lw3[:, None, None, None] * stacked3).sum(0) / lw3.sum()
    assert token_emb3.shape == (B3, S3, H3)
    assert token_emb3.dtype == jnp.float32, "bf16 input must promote to f32 output"
    assert jnp.allclose(token_emb3, ref3, atol=1e-4, rtol=1e-4), "mismatch (test 3)"

    print("KERNEL_OK")
</pallas_src>

<mosaic_0001>
module attributes {stable_mosaic.version = 11 : i64} {
  func.func @kernel(%arg0: i32, %arg1: memref<5xf32, #tpu.memory_space<smem>>, %arg2: memref<4x128xf32, #tpu.memory_space<vmem>>, %arg3: memref<4x128xf32, #tpu.memory_space<vmem>>, %arg4: memref<4x128xf32, #tpu.memory_space<vmem>>, %arg5: memref<4x128xf32, #tpu.memory_space<vmem>>, %arg6: memref<4x128xf32, #tpu.memory_space<vmem>>, %arg7: memref<4x128xf32, #tpu.memory_space<vmem>>) attributes {dimension_semantics = [#tpu.dimension_semantics<parallel>], iteration_bounds = array<i64: 1>, scalar_prefetch = 1 : i64, scratch_operands = 0 : i64, tpu.core_type = #tpu.core_type<tc>, window_params = [{transform_indices = @transform_0, window_bounds = array<i64: 4, 128>}, {transform_indices = @transform_1, window_bounds = array<i64: 4, 128>}, {transform_indices = @transform_2, window_bounds = array<i64: 4, 128>}, {transform_indices = @transform_3, window_bounds = array<i64: 4, 128>}, {transform_indices = @transform_4, window_bounds = array<i64: 4, 128>}, {transform_indices = @transform_5, window_bounds = array<i64: 4, 128>}]} {
    %c0 = arith.constant 0 : index
    %0 = memref.load %arg1[%c0] : memref<5xf32, #tpu.memory_space<smem>>
    %c0_0 = arith.constant 0 : index
    %c0_1 = arith.constant 0 : index
    %1 = vector.load %arg2[%c0_0, %c0_1] : memref<4x128xf32, #tpu.memory_space<vmem>>, vector<4x128xf32>
    %2 = vector.broadcast %0 : f32 to vector<4x128xf32>
    %3 = arith.mulf %2, %1 : vector<4x128xf32>
    %c1 = arith.constant 1 : index
    %4 = memref.load %arg1[%c1] : memref<5xf32, #tpu.memory_space<smem>>
    %c0_2 = arith.constant 0 : index
    %c0_3 = arith.constant 0 : index
    %5 = vector.load %arg3[%c0_2, %c0_3] : memref<4x128xf32, #tpu.memory_space<vmem>>, vector<4x128xf32>
    %6 = vector.broadcast %4 : f32 to vector<4x128xf32>
    %7 = arith.mulf %6, %5 : vector<4x128xf32>
    %8 = arith.addf %3, %7 : vector<4x128xf32>
    %c2 = arith.constant 2 : index
    %9 = memref.load %arg1[%c2] : memref<5xf32, #tpu.memory_space<smem>>
    %c0_4 = arith.constant 0 : index
    %c0_5 = arith.constant 0 : index
    %10 = vector.load %arg4[%c0_4, %c0_5] : memref<4x128xf32, #tpu.memory_space<vmem>>, vector<4x128xf32>
    %11 = vector.broadcast %9 : f32 to vector<4x128xf32>
    %12 = arith.mulf %11, %10 : vector<4x128xf32>
    %13 = arith.addf %8, %12 : vector<4x128xf32>
    %c3 = arith.constant 3 : index
    %14 = memref.load %arg1[%c3] : memref<5xf32, #tpu.memory_space<smem>>
    %c0_6 = arith.constant 0 : index
    %c0_7 = arith.constant 0 : index
    %15 = vector.load %arg5[%c0_6, %c0_7] : memref<4x128xf32, #tpu.memory_space<vmem>>, vector<4x128xf32>
    %16 = vector.broadcast %14 : f32 to vector<4x128xf32>
    %17 = arith.mulf %16, %15 : vector<4x128xf32>
    %18 = arith.addf %13, %17 : vector<4x128xf32>
    %c4 = arith.constant 4 : index
    %19 = memref.load %arg1[%c4] : memref<5xf32, #tpu.memory_space<smem>>
    %c0_8 = arith.constant 0 : index
    %c0_9 = arith.constant 0 : index
    %20 = vector.load %arg6[%c0_8, %c0_9] : memref<4x128xf32, #tpu.memory_space<vmem>>, vector<4x128xf32>
    %21 = vector.broadcast %19 : f32 to vector<4x128xf32>
    %22 = arith.mulf %21, %20 : vector<4x128xf32>
    %23 = arith.addf %18, %22 : vector<4x128xf32>
    %c0_10 = arith.constant 0 : index
    %c0_11 = arith.constant 0 : index
    %24 = vector.load %arg7[%c0_10, %c0_11] : memref<4x128xf32, #tpu.memory_space<vmem>>, vector<4x128xf32>
    tpu.vector_store %arg7[%c0_10, %c0_11], %23 {strides = array<i32>} : memref<4x128xf32, #tpu.memory_space<vmem>>, vector<4x128xf32>,
    return
  }
  func.func @transform_0(%arg0: i32, %arg1: memref<5xf32, #tpu.memory_space<smem>>) -> (i32, i32) {
    %c0_i32 = arith.constant 0 : i32
    %c0_i32_0 = arith.constant 0 : i32
    return %arg0, %c0_i32 : i32, i32
  }
  func.func @transform_1(%arg0: i32, %arg1: memref<5xf32, #tpu.memory_space<smem>>) -> (i32, i32) {
    %c0_i32 = arith.constant 0 : i32
    %c0_i32_0 = arith.constant 0 : i32
    return %arg0, %c0_i32 : i32, i32
  }
  func.func @transform_2(%arg0: i32, %arg1: memref<5xf32, #tpu.memory_space<smem>>) -> (i32, i32) {
    %c0_i32 = arith.constant 0 : i32
    %c0_i32_0 = arith.constant 0 : i32
    return %arg0, %c0_i32 : i32, i32
  }
  func.func @transform_3(%arg0: i32, %arg1: memref<5xf32, #tpu.memory_space<smem>>) -> (i32, i32) {
    %c0_i32 = arith.constant 0 : i32
    %c0_i32_0 = arith.constant 0 : i32
    return %arg0, %c0_i32 : i32, i32
  }
  func.func @transform_4(%arg0: i32, %arg1: memref<5xf32, #tpu.memory_space<smem>>) -> (i32, i32) {
    %c0_i32 = arith.constant 0 : i32
    %c0_i32_0 = arith.constant 0 : i32
    return %arg0, %c0_i32 : i32, i32
  }
  func.func @transform_5(%arg0: i32, %arg1: memref<5xf32, #tpu.memory_space<smem>>) -> (i32, i32) {
    %c0_i32 = arith.constant 0 : i32
    %c0_i32_0 = arith.constant 0 : i32
    return %arg0, %c0_i32 : i32, i32
  }
}

</mosaic_0001>

<bundles_post_ra>
// kernel: tpu_custom_call.1
= control target key start
LH: loop header
LB: loop body
LE: loop exit
PB: predicated region body
PF: predicated region fallthrough
CT: control target
= control target key end

     0   :  { %s231_s0 = inlined_call_operand.hbm [shape: f32[5], index: 0, kind: input, shape index: {}]   ;;  %s232_s1 = inlined_call_operand.hbm [shape: f32[4,128], index: 1, kind: input, shape index: {}]   ;;  %s233_s2 = inlined_call_operand.vmem [shape: f32[4,128], index: 2, kind: input, shape index: {}]   ;;  %s234_s3 = inlined_call_operand.vmem [shape: f32[4,128], index: 3, kind: input, shape index: {}]   ;;  %s235_s4 = inlined_call_operand.vmem [shape: f32[4,128], index: 4, kind: input, shape index: {}]   ;;  %s236_s5 = inlined_call_operand.vmem [shape: f32[4,128], index: 5, kind: input, shape index: {}]   ;;  %s237_s6 = inlined_call_operand.hbm [shape: f32[4,128], index: 6, kind: output, shape index: {}]  }
   0x1   :  { %s85_s23 = scalar_lea.hbm %s231_s0, 16 }
   0x2   :  { %p86_p0 = scmp.ne.s32.totalorder %s231_s0, %s85_s23  ;;  %p89_p1 = scmp.lt.u32.totalorder %s85_s23, %s231_s0 }
   0x4   :  { %p91_p2 = pnand %p89_p1, %p86_p0 }
   0x6   :  { %94 = shalt.err (!%p91_p2)  }
   0x7   :  { %s145_s28 = smov [#allocation3]  }
   0x8   :  { %12 = dma.hbm_to_smem %s231_s0, 16, %s145_s28, [#allocation2] }
   0x9   :  { %139 = dma.done.wait [#allocation2], 16 }
   0xa   :  { %140 = vsyncadd [#allocation2], 4294967280 }
   0xb   :  { %14 = sfence }
   0xc   :  { %15 = vsyncpa [#allocation5], 0 }
   0xd   :  { %16 = vsyncpa [#allocation6], 0  ;;  %s146_s7 = smov [#allocation4]   ;;  %s95_s11 = scalar_lea.hbm %s232_s1, 64 }
   0xe   :  { %s23_s8 = sshll.u32 %s146_s7, 4  ;;  %p96_p3 = scmp.ne.s32.totalorder %s232_s1, %s95_s11  ;;  %s24_s8 = int_to_ptr.vmem [resolvable:$true] %s23_s8 }
   0xf   :  { %p99_p4 = scmp.lt.u32.totalorder %s95_s11, %s232_s1 }
  0x11   :  { %p101_p5 = pnand %p99_p4, %p96_p3 }
  0x13   :  { %104 = shalt.err (!%p101_p5)
}
  0x14   :  { %s105_s0 = scalar_lea.vmem %s24_s8, 64  ;;  %p110_p7 = scmp.lt.s32.totalorder %s24_s8, %s24_s8 }
  0x15   :  { %p106_p6 = scmp.ne.s32.totalorder %s24_s8, %s105_s0  ;;  %p111_p8 = scmp.lt.s32.totalorder %s105_s0, %s105_s0 }
  0x17   :  { %p112_p9 = por %p111_p8, %p110_p7 }
  0x19   :  { %p113_p10 = pnand %p112_p9, %p106_p6 }
  0x1b   :  { %116 = shalt.err (!%p113_p10)
}
  0x1c   :  { %26 = dma.hbm_to_vmem [thread:$0]  %s232_s1, 64, %s24_s8, [#allocation5]  }
  0x1d   :  { %141 = dma.done.wait [#allocation5], 64  }
  0x1e   :  { %142 = vsyncadd [#allocation5], 4294967232  ;;  %s38_s18 = sld [smem:[#allocation3]]  ;;  %s78_s19 = sld [smem:[#allocation3 + $0x1]]  ;;  %v39_v0 = vld [vmem:[#allocation4] sm:$0xf] }
  0x1f   :  { %s79_s20 = sld [smem:[#allocation3 + $0x2]]  ;;  %s80_s21 = sld [smem:[#allocation3 + $0x3]]  ;;  %v43_v2 = vld [vmem:[%s233_s2] sm:$0xf] }
  0x20   :  { %s81_s22 = sld [smem:[#allocation3 + $0x4]]  ;;  %v48_v4 = vld [vmem:[%s234_s3] sm:$0xf]  ;;  %s147_s2 = smov [#allocation7]  }
  0x21   :  { %v53_v8 = vld [vmem:[%s235_s4] sm:$0xf]  ;;  %s69_s3 = sshll.u32 %s147_s2, 4  ;;  %s70_s3 = int_to_ptr.vmem [resolvable:$true] %s69_s3 }
  0x22   :  { %v58_v11 = vld [vmem:[%s236_s5] sm:$0xf]  ;;  %s117_s30 = scalar_lea.vmem %s70_s3, 64  ;;  %p122_p12 = scmp.lt.s32.totalorder %s70_s3, %s70_s3 }
  0x23   :  { %p118_p11 = scmp.ne.s32.totalorder %s70_s3, %s117_s30  ;;  %p123_p13 = scmp.lt.s32.totalorder %s117_s30, %s117_s30 }
  0x24   :  { %v40_v1 = vstv %s38_s18  ;;  %v44_v3 = vstv %s78_s19 }
  0x25   :  { %v41_v5 = vmul.f32 %v40_v1, %v39_v0  ;;  %v45_v6 = vmul.f32 %v44_v3, %v43_v2  ;;  %v49_v7 = vstv %s79_s20  ;;  %v54_v9 = vstv %s80_s21  ;;  %p124_p0 = por %p123_p13, %p122_p12 }
  0x26   :  { %v50_v10 = vmul.f32 %v49_v7, %v48_v4  ;;  %v59_v12 = vstv %s81_s22  ;;  %v55_v14 = vmul.f32 %v54_v9, %v53_v8 }
  0x27   :  { %v46_v13 = vadd.f32 %v45_v6, %v41_v5  ;;  %v60_v16 = vmul.f32 %v59_v12, %v58_v11  ;;  %p125_p1 = pnand %p124_p0, %p118_p11 }
  0x29   :  { %v51_v15 = vadd.f32 %v50_v10, %v46_v13 }
  0x2b   :  { %v56_v17 = vadd.f32 %v55_v14, %v51_v15 }
  0x2d   :  { %v61_v18 = vadd.f32 %v60_v16, %v56_v17 }
  0x2f   :  { %62 = vst [vmem:[#allocation7] sm:$0xf] %v61_v18 }
  0x30   :  { %128 = shalt.err (!%p125_p1)
}
  0x31   :  { %s129_s7 = scalar_lea.hbm %s237_s6, 64 }
  0x32   :  { %p130_p2 = scmp.ne.s32.totalorder %s237_s6, %s129_s7  ;;  %p133_p3 = scmp.lt.u32.totalorder %s129_s7, %s237_s6 }
  0x34   :  { %p135_p4 = pnand %p133_p3, %p130_p2 }
  0x36   :  { %138 = shalt.err (!%p135_p4)
}
  0x37   :  { %72 = dma.vmem_to_hbm [thread:$0]  %s70_s3, 64, %s237_s6, [#allocation6]  }
  0x38   :  { %143 = dma.done.wait [#allocation6], 64  }
  0x39   :  { %144 = vsyncadd [#allocation6], 4294967232 }
  0x3a   :  { %76 = vsyncpa [#allocation5], 1 }
  0x3b   :  { %77 = vsyncpa [#allocation6], 1 }

</bundles_post_ra>
